<compile_context>
chip_gen: v6e
topology: v6e:2x2x1
jax: 0.10.0
libtpu: 0.0.40
codegen_flags: <defaults>
</compile_context>

<pallas_src>
import functools

import jax
import jax.numpy as jnp
from jax.experimental import pallas as pl
from jax.experimental.pallas import tpu as pltpu


# --------------------------------------------------------------------------
# Kernels
# --------------------------------------------------------------------------
def _attention_mask_kernel(x_ref, o_ref, *, planes, plane_cols, scale):
    """Tile is (row_block, planes * plane_cols); each row holds `planes`
    consecutive (H*W) planes flattened back-to-back (lane-dense)."""
    x = x_ref[...]                                            # native dtype
    if planes == 1:
        # f32 accumulation; the cast feeds only the reduction.
        xsum = jnp.sum(x.astype(jnp.float32), axis=-1, keepdims=True)
        inv = (scale / xsum).astype(x.dtype)                  # (rb, 1)
        o_ref[...] = x * inv                                  # native-dtype scaling
    else:
        total = planes * plane_cols
        # Plane-membership matrices built from iota (no integer division).
        lane_g = jax.lax.broadcasted_iota(jnp.int32, (total, planes), 0)
        pid_g = jax.lax.broadcasted_iota(jnp.int32, (total, planes), 1)
        lo_g = pid_g * plane_cols
        gather = ((lane_g >= lo_g) & (lane_g < lo_g + plane_cols)).astype(x.dtype)

        # Per-plane sums on the (otherwise idle) MXU, f32 accumulation.
        prec = jax.lax.Precision.HIGHEST if x.dtype == jnp.float32 else None
        xsum = jnp.dot(x, gather, preferred_element_type=jnp.float32,
                       precision=prec)                        # (rb, planes)
        inv = scale / xsum                                    # (rb, planes) f32

        # Broadcast each plane's factor back across its lanes (exact selection).
        lane_s = jax.lax.broadcasted_iota(jnp.int32, (planes, total), 1)
        pid_s = jax.lax.broadcasted_iota(jnp.int32, (planes, total), 0)
        lo_s = pid_s * plane_cols
        scatter = ((lane_s >= lo_s) & (lane_s < lo_s + plane_cols)).astype(jnp.float32)
        inv_full = jnp.dot(inv, scatter, preferred_element_type=jnp.float32,
                           precision=jax.lax.Precision.HIGHEST)  # (rb, total) f32

        o_ref[...] = x * inv_full.astype(x.dtype)             # native-dtype scaling


def _rowsum_kernel(x_ref, sum_ref, *, cols, col_block):
    """Pass 1 of the column-tiled fallback: grid-carried f32 row sums."""
    j = pl.program_id(1)

    @pl.when(j == 0)
    def _init():
        sum_ref[...] = jnp.zeros_like(sum_ref)

    x = x_ref[...].astype(jnp.float32)
    # Mask lanes beyond the logical width (partial last column block).
    lane = jax.lax.broadcasted_iota(jnp.int32, x.shape, 1) + j * col_block
    x = jnp.where(lane < cols, x, 0.0)
    sum_ref[...] += jnp.sum(x, axis=-1, keepdims=True)


def _scale_kernel(x_ref, sum_ref, o_ref, *, scale):
    """Pass 2 of the fallback: scale each row by H*W*0.5 / rowsum."""
    inv = (scale / sum_ref[...]).astype(x_ref.dtype)          # (rb, 1)
    o_ref[...] = x_ref[...] * inv


# --------------------------------------------------------------------------
# Tiling helpers
# --------------------------------------------------------------------------
def _round_up(v, m):
    return ((v + m - 1) // m) * m


def _chip_tuning():
    """Chip-aware block target / VMEM budget (stay inside default scoped VMEM)."""
    kind = ""
    try:
        kind = jax.devices()[0].device_kind.lower()
    except Exception:
        pass
    if "v7" in kind:
        # 64 MiB physical / 32 MiB default scoped VMEM; 2 TensorCores.
        return dict(target_bytes=6 << 20, budget_bytes=24 << 20, min_steps=2)
    if "v6" in kind:
        return dict(target_bytes=4 << 20, budget_bytes=24 << 20, min_steps=1)
    # v5e / unknown: 16 MiB default scoped VMEM.
    return dict(target_bytes=2 << 20, budget_bytes=12 << 20, min_steps=1)


def _choose_packing(rows, cols, max_row_elems=2048):
    """Pick k (a divisor of rows) planes per kernel row to maximise lane density."""
    if cols % 128 == 0 or cols >= max_row_elems:
        return 1
    best_k = 1
    best_util = cols / _round_up(cols, 128)
    for k in range(2, rows + 1):
        if rows % k:
            continue
        elems = k * cols
        if elems > max_row_elems:
            break
        util = elems / _round_up(elems, 128)
        if util > best_util + 1e-6:
            best_k, best_util = k, util
            if util > 0.999:
                break
    return best_k


def _choose_row_block(rows2, row_bytes, target_bytes, budget_bytes, min_steps):
    """Rows per block: ~target bytes, clamped by an explicit VMEM budget
    (in + out, double-buffered = 4 block-sized buffers)."""
    budget_rows = max(1, budget_bytes // (4 * row_bytes))
    target_rows = max(1, target_bytes // row_bytes)
    rb = min(rows2, budget_rows, target_rows)
    # v7x: guarantee >= min_steps grid steps so both TensorCores get work.
    if min_steps > 1 and rb >= rows2 and rows2 >= 8 * min_steps:
        rb = -(-rows2 // min_steps)
    if rb < rows2:
        up = _round_up(rb, 8)
        rb = up if up <= budget_rows else max(8, (rb // 8) * 8)
        rb = min(rb, rows2)
    return int(rb)


# --------------------------------------------------------------------------
# Wrapper
# --------------------------------------------------------------------------
def _two_pass(x2, scale, budget_bytes, itemsize):
    """Column-tiled fallback for rows too wide to fit a single-pass block."""
    rows, cols = x2.shape
    row_block = rows if rows < 8 else 8
    tile_budget = max(budget_bytes // 4, row_block * 128 * itemsize)
    col_block = max(128, (tile_budget // (row_block * itemsize)) // 128 * 128)
    if col_block >= cols:
        col_block = cols
    grid = (pl.cdiv(rows, row_block), pl.cdiv(cols, col_block))

    sums = pl.pallas_call(
        functools.partial(_rowsum_kernel, cols=cols, col_block=col_block),
        out_shape=jax.ShapeDtypeStruct((rows, 1), jnp.float32),
        grid=grid,
        in_specs=[pl.BlockSpec((row_block, col_block), lambda i, j: (i, j))],
        out_specs=pl.BlockSpec((row_block, 1), lambda i, j: (i, 0)),
        compiler_params=pltpu.CompilerParams(
            dimension_semantics=("parallel", "arbitrary")),
    )(x2)

    out2 = pl.pallas_call(
        functools.partial(_scale_kernel, scale=scale),
        out_shape=jax.ShapeDtypeStruct((rows, cols), x2.dtype),
        grid=grid,
        in_specs=[pl.BlockSpec((row_block, col_block), lambda i, j: (i, j)),
                  pl.BlockSpec((row_block, 1), lambda i, j: (i, 0))],
        out_specs=pl.BlockSpec((row_block, col_block), lambda i, j: (i, j)),
        compiler_params=pltpu.CompilerParams(
            dimension_semantics=("parallel", "parallel")),
    )(x2, sums)
    return out2


def attention_mask(x, *, force_two_pass=False):
    """x: (B, C, H, W). Returns x / sum_{H,W}(x) * H * W * 0.5 (same dtype)."""
    B, C, H, W = x.shape
    rows, cols = B * C, H * W
    scale = float(H * W) * 0.5                 # decoupled from block shapes
    itemsize = jnp.dtype(x.dtype).itemsize
    tune = _chip_tuning()

    x2 = x.reshape(rows, cols)

    # If even the smallest legal single-pass block (8 rows, or all rows if
    # fewer) cannot fit the VMEM budget, use the column-tiled two-pass path.
    min_rows = rows if rows < 8 else 8
    if force_two_pass or 4 * min_rows * cols * itemsize > tune["budget_bytes"]:
        return _two_pass(x2, scale, tune["budget_bytes"], itemsize).reshape(B, C, H, W)

    # Pack several planes per kernel row so the lane axis is (close to) dense.
    planes = _choose_packing(rows, cols)
    rows2, cols2 = rows // planes, planes * cols
    x2 = x2.reshape(rows2, cols2)

    budget = tune["budget_bytes"]
    if planes > 1:
        budget = max(budget - (2 << 20), budget // 2)   # headroom for mask temps

    row_block = _choose_row_block(rows2, cols2 * itemsize, tune["target_bytes"],
                                  budget, tune["min_steps"])

    kernel = functools.partial(_attention_mask_kernel, planes=planes,
                               plane_cols=cols, scale=scale)
    out2 = pl.pallas_call(
        kernel,
        out_shape=jax.ShapeDtypeStruct((rows2, cols2), x.dtype),
        grid=(pl.cdiv(rows2, row_block),),
        in_specs=[pl.BlockSpec((row_block, cols2), lambda i: (i, 0))],
        out_specs=pl.BlockSpec((row_block, cols2), lambda i: (i, 0)),
        compiler_params=pltpu.CompilerParams(
            dimension_semantics=("parallel",)),
    )(x2)
    return out2.reshape(B, C, H, W)


def _reference(x):
    xsum = jnp.sum(x, axis=(2, 3), keepdims=True)
    return x / xsum * x.shape[2] * x.shape[3] * 0.5


# --------------------------------------------------------------------------
# Self-test
# --------------------------------------------------------------------------
if __name__ == "__main__":
    key = jax.random.PRNGKey(0)
    k1, k2, k3 = jax.random.split(key, 3)

    # Positive inputs keep the normalizer well away from zero (matches the
    # post-activation attention map this module normalizes).

    # 1) Lane-aligned spatial map (16x16 -> H*W = 256), f32: single-pass, no packing.
    x_a = jax.random.uniform(k1, (2, 4, 16, 16), dtype=jnp.float32) + 0.1
    out_a = jax.block_until_ready(attention_mask(x_a))
    assert out_a.shape == x_a.shape
    assert jnp.allclose(out_a, _reference(x_a), rtol=1e-5, atol=1e-5)

    # 2) MobileNet-style 14x14 map (H*W = 196, not a multiple of 128):
    #    plane-packing path (lane-dense DMA + MXU per-plane sums).
    x_b = jax.random.uniform(k2, (2, 4, 14, 14), dtype=jnp.float32) + 0.1
    out_b = jax.block_until_ready(attention_mask(x_b))
    assert jnp.allclose(out_b, _reference(x_b), rtol=1e-4, atol=1e-4)

    # 3) bf16 input: reduction accumulates in f32, per-element scaling in bf16.
    x_c = (jax.random.uniform(k3, (2, 4, 16, 16), dtype=jnp.float32) + 0.1
           ).astype(jnp.bfloat16)
    out_c = jax.block_until_ready(attention_mask(x_c))
    ref_c = _reference(x_c.astype(jnp.float32))
    assert jnp.allclose(out_c.astype(jnp.float32), ref_c, rtol=5e-2, atol=5e-2)

    # 4) Column-tiled two-pass fallback (only auto-selected when one plane row
    #    would blow the VMEM budget); exercised explicitly here.
    out_d = jax.block_until_ready(attention_mask(x_a, force_two_pass=True))
    assert jnp.allclose(out_d, _reference(x_a), rtol=1e-5, atol=1e-5)

    print("KERNEL_OK")
</pallas_src>

<mosaic_0001>
module attributes {stable_mosaic.version = 11 : i64} {
  func.func @_attention_mask_kernel(%arg0: i32, %arg1: memref<8x256xf32, #tpu.memory_space<vmem>>, %arg2: memref<8x256xf32, #tpu.memory_space<vmem>>) attributes {dimension_semantics = [#tpu.dimension_semantics<parallel>], iteration_bounds = array<i64: 1>, scalar_prefetch = 0 : i64, scratch_operands = 0 : i64, tpu.core_type = #tpu.core_type<tc>, window_params = [{transform_indices = @transform_0, window_bounds = array<i64: 8, 256>}, {transform_indices = @transform_1, window_bounds = array<i64: 8, 256>}]} {
    %c0 = arith.constant 0 : index
    %c0_0 = arith.constant 0 : index
    %0 = vector.load %arg1[%c0, %c0_0] : memref<8x256xf32, #tpu.memory_space<vmem>>, vector<8x256xf32>
    %cst = arith.constant dense<0.000000e+00> : vector<8xf32>
    %1 = vector.multi_reduction <add>, %0, %cst [1] : vector<8x256xf32> to vector<8xf32>
    %2 = vector.shape_cast %1 : vector<8xf32> to vector<8x1xf32>
    %cst_1 = arith.constant 1.280000e+02 : f32
    %3 = vector.broadcast %cst_1 : f32 to vector<8x1xf32>
    %4 = arith.divf %3, %2 : vector<8x1xf32>
    %5 = vector.broadcast %4 : vector<8x1xf32> to vector<8x256xf32>
    %6 = arith.mulf %0, %5 : vector<8x256xf32>
    %c0_2 = arith.constant 0 : index
    %c0_3 = arith.constant 0 : index
    %7 = vector.load %arg2[%c0_2, %c0_3] : memref<8x256xf32, #tpu.memory_space<vmem>>, vector<8x256xf32>
    tpu.vector_store %arg2[%c0_2, %c0_3], %6 {strides = array<i32>} : memref<8x256xf32, #tpu.memory_space<vmem>>, vector<8x256xf32>,
    return
  }
  func.func @transform_0(%arg0: i32) -> (i32, i32) {
    %c0_i32 = arith.constant 0 : i32
    %c0_i32_0 = arith.constant 0 : i32
    return %arg0, %c0_i32 : i32, i32
  }
  func.func @transform_1(%arg0: i32) -> (i32, i32) {
    %c0_i32 = arith.constant 0 : i32
    %c0_i32_0 = arith.constant 0 : i32
    return %arg0, %c0_i32 : i32, i32
  }
}

</mosaic_0001>

<bundles_post_ra>
// kernel: tpu_custom_call.1
= control target key start
LH: loop header
LB: loop body
LE: loop exit
PB: predicated region body
PF: predicated region fallthrough
CT: control target
= control target key end

     0   :  { %6 = vsyncpa [#allocation3], 0  ;;  %s113_s0 = inlined_call_operand.hbm [shape: f32[8,256], index: 0, kind: input, shape index: {}]   ;;  %s114_s1 = inlined_call_operand.hbm [shape: f32[8,256], index: 1, kind: output, shape index: {}]  }
   0x1   :  { %7 = vsyncpa [#allocation4], 0  ;;  %s95_s6 = smov [#allocation2]  }
   0x2   :  { %s14_s7 = sshll.u32 %s95_s6, 4  ;;  %s15_s7 = int_to_ptr.vmem [resolvable:$true] %s14_s7 }
   0x3   :  { %s59_s8 = scalar_lea.vmem %s15_s7, 256  ;;  %p64_p1 = scmp.lt.s32.totalorder %s15_s7, %s15_s7 }
   0x4   :  { %p60_p0 = scmp.ne.s32.totalorder %s15_s7, %s59_s8  ;;  %p65_p2 = scmp.lt.s32.totalorder %s59_s8, %s59_s8 }
   0x6   :  { %p66_p3 = por %p65_p2, %p64_p1 }
   0x8   :  { %p67_p4 = pnand %p66_p3, %p60_p0 }
   0xa   :  { %70 = shalt.err (!%p67_p4)
}
   0xb   :  { %17 = dma.hbm_to_vmem [thread:$0]  %s113_s0, 256, %s15_s7, [#allocation3]  }
   0xc   :  { %91 = dma.done.wait [#allocation3], 256  }
   0xd   :  { %92 = vsyncadd [#allocation3], 4294967040  ;;  %v21_v0 = vld [vmem:[#allocation2] sm:$0xff]  ;;  %v22_v1 = vld [vmem:[#allocation2 + $0x8] sm:$0xff]  ;;  %s96_s11 = smov [#allocation5]  }
   0xe   :  { %v23_v2 = vadd.f32 %v22_v1, %v21_v0  ;;  %s38_s12 = sshll.u32 %s96_s11, 4  ;;  %s39_s12 = int_to_ptr.vmem [resolvable:$true] %s38_s12 }
   0xf   :  { %s71_s13 = scalar_lea.vmem %s39_s12, 256  ;;  %p76_p6 = scmp.lt.s32.totalorder %s39_s12, %s39_s12 }
  0x10   :  { %24 = vadd.xlane.f32.xlu0 %v23_v2  ;;  %p72_p5 = scmp.ne.s32.totalorder %s39_s12, %s71_s13  ;;  %p77_p7 = scmp.lt.s32.totalorder %s71_s13, %s71_s13 }
  0x12   :  { %p78_p8 = por %p77_p7, %p76_p6 }
  0x14   :  { %p79_p9 = pnand %p78_p8, %p72_p5 }
  0x99   :  { %v25_v3 = vpop.xlane.xlu0 %24 }
  0x9a   :  { %49 = vrcp.f32 %v25_v3 }
  0xa7   :  { %v50_v4 = vpop.eup %49 }
  0xa8   :  { %v27_v5 = vmul.f32 128.0, %v50_v4 }
  0xaa   :  { %v28_v6 = vmul.f32 %v27_v5, %v21_v0  ;;  %v29_v7 = vmul.f32 %v27_v5, %v22_v1 }
  0xac   :  { %30 = vst [vmem:[#allocation5] sm:$0xff] %v28_v6  ;;  %31 = vst [vmem:[#allocation5 + $0x8] sm:$0xff] %v29_v7 }
  0xad   :  { %82 = shalt.err (!%p79_p9)
}
  0xae   :  { %41 = dma.vmem_to_hbm [thread:$0]  %s39_s12, 256, %s114_s1, [#allocation4]  }
  0xaf   :  { %93 = dma.done.wait [#allocation4], 256  }
  0xb0   :  { %94 = vsyncadd [#allocation4], 4294967040 }
  0xb1   :  { %45 = vsyncpa [#allocation3], 1 }
  0xb2   :  { %46 = vsyncpa [#allocation4], 1 }

</bundles_post_ra>
